<compile_context>
chip_gen: v7x
topology: tpu7x:2x2x1
jax: 0.10.0
libtpu: 0.0.40
codegen_flags: <defaults>
</compile_context>

<pallas_src>
import math

import jax
import jax.numpy as jnp
from jax.experimental import pallas as pl
from jax.experimental.pallas import tpu as pltpu


def gaussian_policy_kernel(c_ref, obs_ref, w1_ref, b1_ref, w2_ref, b2_ref,
                           w3_ref, b3_ref, std_ref, eps_ref, a_ref, logp_ref):
    # MLP (tanh hidden layers, identity output) with batch on the lane axis:
    # y = W @ x + b, W stored PyTorch-style (out, in), x = (in, TB).
    x = obs_ref[...]                                                 # (obs_dim, TB) bf16
    h = jnp.tanh(jnp.dot(w1_ref[...], x,
                         preferred_element_type=jnp.float32) + b1_ref[...])
    h = jnp.tanh(jnp.dot(w2_ref[...], h.astype(jnp.bfloat16),
                         preferred_element_type=jnp.float32) + b2_ref[...])
    mu = jnp.dot(w3_ref[...], h.astype(jnp.bfloat16),
                 preferred_element_type=jnp.float32) + b3_ref[...]   # (act_dim, TB) f32

    eps = eps_ref[...]                                               # (act_dim, TB) f32
    a_ref[...] = mu + std_ref[...] * eps                             # reparameterized sample

    # Normal(mu, std).log_prob(a).sum(over act):  with a = mu + std * eps,
    # (a - mu) / std == eps exactly, so
    #   logp = -0.5 * sum(eps^2) - sum(log_std) - act_dim * 0.5 * log(2*pi)
    # The constant tail is precomputed in the wrapper and passed via SMEM.
    logp_ref[...] = -0.5 * jnp.sum(eps * eps, axis=0, keepdims=True) + c_ref[0, 0]


def _round_up(x, m):
    return ((x + m - 1) // m) * m


def gaussian_policy_forward(obs, params, eps):
    """GaussianPolicy forward pass.

    obs: (B, obs_dim) f32, eps: (B, act_dim) ~ N(0, 1).
    Returns (action (B, act_dim) f32, log_prob (B,) f32).
    """
    w1, b1, w2, b2, w3, b3, log_std = params
    B, obs_dim = obs.shape
    act_dim = w3.shape[0]

    # Batch tile on the lane axis: multiple of 128, capped so double-buffered
    # input/output blocks stay well under v7x's 64 MiB VMEM (and the 16/32 MiB
    # scoped defaults everywhere) -- no vmem_limit_bytes override needed.
    TB = min(1024, _round_up(B, 128))
    Bp = _round_up(B, TB)

    # Batch-on-lane layout + zero padding to a multiple of the batch tile.
    obs_t = jnp.zeros((obs_dim, Bp), jnp.bfloat16)
    obs_t = obs_t.at[:, :B].set(obs.T.astype(jnp.bfloat16))
    eps_t = jnp.zeros((act_dim, Bp), jnp.float32)
    eps_t = eps_t.at[:, :B].set(eps.T)

    # Hoisted log_std math (constant across all grid steps).
    std = jnp.exp(log_std)                                           # (act_dim, 1)
    c = (-jnp.sum(log_std)
         - act_dim * 0.5 * math.log(2.0 * math.pi)).reshape(1, 1).astype(jnp.float32)

    w1b = w1.astype(jnp.bfloat16)
    w2b = w2.astype(jnp.bfloat16)
    w3b = w3.astype(jnp.bfloat16)

    def resident(shape):
        # Full-extent block, same block index every step -> DMA'd once,
        # stays resident in VMEM across the whole grid.
        return pl.BlockSpec(shape, lambda i: (0, 0))

    a_t, logp_t = pl.pallas_call(
        gaussian_policy_kernel,
        grid=(Bp // TB,),
        in_specs=[
            pl.BlockSpec(memory_space=pltpu.MemorySpace.SMEM),       # c, (1, 1) scalar
            pl.BlockSpec((obs_dim, TB), lambda i: (0, i)),           # obs (streamed)
            resident(w1b.shape), resident(b1.shape),
            resident(w2b.shape), resident(b2.shape),
            resident(w3b.shape), resident(b3.shape),
            resident(std.shape),
            pl.BlockSpec((act_dim, TB), lambda i: (0, i)),           # eps (streamed)
        ],
        out_specs=(
            pl.BlockSpec((act_dim, TB), lambda i: (0, i)),           # a, lane-dense
            pl.BlockSpec((1, TB), lambda i: (0, i)),                 # logp, lane-dense
        ),
        out_shape=(
            jax.ShapeDtypeStruct((act_dim, Bp), jnp.float32),
            jax.ShapeDtypeStruct((1, Bp), jnp.float32),
        ),
        compiler_params=pltpu.CompilerParams(
            dimension_semantics=("parallel",)),                      # v7x: 2 TCs
    )(c, obs_t, w1b, b1, w2b, b2, w3b, b3, std, eps_t)

    a = a_t[:, :B].T             # (B, act_dim)
    logp = logp_t[0, :B]         # (B,)
    return a, logp


def init_params(key, obs_dim, hidden_sizes, act_dim):
    """Deterministic synthetic parameters (PyTorch-like uniform fan-in init).

    Weights stored PyTorch-style (out, in); biases (out, 1); log_std (act_dim, 1).
    """
    sizes = [obs_dim] + list(hidden_sizes) + [act_dim]
    params = []
    for i in range(len(sizes) - 1):
        fan_in, fan_out = sizes[i], sizes[i + 1]
        key, kw, kb = jax.random.split(key, 3)
        bound = 1.0 / math.sqrt(fan_in)
        w = jax.random.uniform(kw, (fan_out, fan_in), jnp.float32, -bound, bound)
        b = jax.random.uniform(kb, (fan_out, 1), jnp.float32, -bound, bound)
        params += [w, b]
    # log_std parameter, initialized to -0.5 as in the PyTorch module.
    log_std = jnp.full((act_dim, 1), -0.5, dtype=jnp.float32)
    params.append(log_std)
    return tuple(params)


if __name__ == "__main__":
    obs_dim = 16
    hidden_sizes = [32, 32]
    act_dim = 8
    batch = 8

    key = jax.random.PRNGKey(0)
    k_params, k_obs, k_eps = jax.random.split(key, 3)

    params = init_params(k_params, obs_dim, hidden_sizes, act_dim)
    obs = jax.random.normal(k_obs, (batch, obs_dim), dtype=jnp.float32)
    eps = jax.random.normal(k_eps, (batch, act_dim), dtype=jnp.float32)

    a, logp = gaussian_policy_forward(obs, params, eps)
    jax.block_until_ready((a, logp))

    assert a.shape == (batch, act_dim)
    assert logp.shape == (batch,)
    assert bool(jnp.all(jnp.isfinite(a))) and bool(jnp.all(jnp.isfinite(logp)))

    # Pure-JAX f32 reference. mu goes through bf16 matmuls in the kernel, so the
    # action gets a loose tolerance; logp depends only on f32 eps/log_std and
    # should match tightly.
    w1, b1, w2, b2, w3, b3, log_std = params
    h_fp32 = jnp.tanh(obs @ w1.T + b1[:, 0])
    h_fp32 = jnp.tanh(h_fp32 @ w2.T + b2[:, 0])
    mu_fp32 = h_fp32 @ w3.T + b3[:, 0]
    std_fp32 = jnp.exp(log_std[:, 0])
    a_fp32 = mu_fp32 + std_fp32 * eps
    logp_fp32 = jnp.sum(-0.5 * eps ** 2 - log_std[:, 0]
                        - 0.5 * math.log(2.0 * math.pi), axis=-1)
    assert bool(jnp.allclose(a, a_fp32, atol=1e-1))
    assert bool(jnp.allclose(logp, logp_fp32, atol=1e-3))

    print("KERNEL_OK")
</pallas_src>

<mosaic_0001>
module attributes {stable_mosaic.version = 11 : i64} {
  func.func @gaussian_policy_kernel(%arg0: i32, %arg1: memref<1x1xf32, #tpu.memory_space<smem>>, %arg2: memref<16x128xbf16, #tpu.memory_space<vmem>>, %arg3: memref<32x16xbf16, #tpu.memory_space<vmem>>, %arg4: memref<32x1xf32, #tpu.memory_space<vmem>>, %arg5: memref<32x32xbf16, #tpu.memory_space<vmem>>, %arg6: memref<32x1xf32, #tpu.memory_space<vmem>>, %arg7: memref<8x32xbf16, #tpu.memory_space<vmem>>, %arg8: memref<8x1xf32, #tpu.memory_space<vmem>>, %arg9: memref<8x1xf32, #tpu.memory_space<vmem>>, %arg10: memref<8x128xf32, #tpu.memory_space<vmem>>, %arg11: memref<8x128xf32, #tpu.memory_space<vmem>>, %arg12: memref<1x128xf32, #tpu.memory_space<vmem>>) attributes {dimension_semantics = [#tpu.dimension_semantics<parallel>], iteration_bounds = array<i64: 1>, scalar_prefetch = 0 : i64, scratch_operands = 0 : i64, tpu.core_type = #tpu.core_type<tc>, window_params = [{transform_indices = @transform_0, window_bounds = array<i64: 1, 1>}, {transform_indices = @transform_1, window_bounds = array<i64: 16, 128>}, {pipeline_mode = #tpu.pipeline_mode<synchronous>, transform_indices = @transform_2, window_bounds = array<i64: 32, 16>}, {pipeline_mode = #tpu.pipeline_mode<synchronous>, transform_indices = @transform_3, window_bounds = array<i64: 32, 1>}, {pipeline_mode = #tpu.pipeline_mode<synchronous>, transform_indices = @transform_4, window_bounds = array<i64: 32, 32>}, {pipeline_mode = #tpu.pipeline_mode<synchronous>, transform_indices = @transform_5, window_bounds = array<i64: 32, 1>}, {pipeline_mode = #tpu.pipeline_mode<synchronous>, transform_indices = @transform_6, window_bounds = array<i64: 8, 32>}, {pipeline_mode = #tpu.pipeline_mode<synchronous>, transform_indices = @transform_7, window_bounds = array<i64: 8, 1>}, {pipeline_mode = #tpu.pipeline_mode<synchronous>, transform_indices = @transform_8, window_bounds = array<i64: 8, 1>}, {transform_indices = @transform_9, window_bounds = array<i64: 8, 128>}, {transform_indices = @transform_10, window_bounds = array<i64: 8, 128>}, {transform_indices = @transform_11, window_bounds = array<i64: 1, 128>}]} {
    %c0 = arith.constant 0 : index
    %c0_0 = arith.constant 0 : index
    %0 = vector.load %arg2[%c0, %c0_0] : memref<16x128xbf16, #tpu.memory_space<vmem>>, vector<16x128xbf16>
    %c0_1 = arith.constant 0 : index
    %c0_2 = arith.constant 0 : index
    %1 = vector.load %arg3[%c0_1, %c0_2] : memref<32x16xbf16, #tpu.memory_space<vmem>>, vector<32x16xbf16>
    %cst = arith.constant dense<0.000000e+00> : vector<32x128xf32>
    %2 = tpu.matmul %1, %0, %cst {dimension_numbers = #tpu.dot_dimension_numbers<[1], [0], [0], [1], [0, 0, 1, 1], [], []>} : vector<32x16xbf16>, vector<16x128xbf16>, vector<32x128xf32> -> vector<32x128xf32>
    %c0_3 = arith.constant 0 : index
    %c0_4 = arith.constant 0 : index
    %3 = vector.load %arg4[%c0_3, %c0_4] : memref<32x1xf32, #tpu.memory_space<vmem>>, vector<32x1xf32>
    %4 = vector.broadcast %3 : vector<32x1xf32> to vector<32x128xf32>
    %5 = arith.addf %2, %4 : vector<32x128xf32>
    %6 = math.tanh %5 : vector<32x128xf32>
    %c0_5 = arith.constant 0 : index
    %c0_6 = arith.constant 0 : index
    %7 = vector.load %arg5[%c0_5, %c0_6] : memref<32x32xbf16, #tpu.memory_space<vmem>>, vector<32x32xbf16>
    %8 = arith.truncf %6 : vector<32x128xf32> to vector<32x128xbf16>
    %cst_7 = arith.constant dense<0.000000e+00> : vector<32x128xf32>
    %9 = tpu.matmul %7, %8, %cst_7 {dimension_numbers = #tpu.dot_dimension_numbers<[1], [0], [0], [1], [0, 0, 1, 1], [], []>} : vector<32x32xbf16>, vector<32x128xbf16>, vector<32x128xf32> -> vector<32x128xf32>
    %c0_8 = arith.constant 0 : index
    %c0_9 = arith.constant 0 : index
    %10 = vector.load %arg6[%c0_8, %c0_9] : memref<32x1xf32, #tpu.memory_space<vmem>>, vector<32x1xf32>
    %11 = vector.broadcast %10 : vector<32x1xf32> to vector<32x128xf32>
    %12 = arith.addf %9, %11 : vector<32x128xf32>
    %13 = math.tanh %12 : vector<32x128xf32>
    %c0_10 = arith.constant 0 : index
    %c0_11 = arith.constant 0 : index
    %14 = vector.load %arg7[%c0_10, %c0_11] : memref<8x32xbf16, #tpu.memory_space<vmem>>, vector<8x32xbf16>
    %15 = arith.truncf %13 : vector<32x128xf32> to vector<32x128xbf16>
    %cst_12 = arith.constant dense<0.000000e+00> : vector<8x128xf32>
    %16 = tpu.matmul %14, %15, %cst_12 {dimension_numbers = #tpu.dot_dimension_numbers<[1], [0], [0], [1], [0, 0, 1, 1], [], []>} : vector<8x32xbf16>, vector<32x128xbf16>, vector<8x128xf32> -> vector<8x128xf32>
    %c0_13 = arith.constant 0 : index
    %c0_14 = arith.constant 0 : index
    %17 = vector.load %arg8[%c0_13, %c0_14] : memref<8x1xf32, #tpu.memory_space<vmem>>, vector<8x1xf32>
    %18 = vector.broadcast %17 : vector<8x1xf32> to vector<8x128xf32>
    %19 = arith.addf %16, %18 : vector<8x128xf32>
    %c0_15 = arith.constant 0 : index
    %c0_16 = arith.constant 0 : index
    %20 = vector.load %arg10[%c0_15, %c0_16] : memref<8x128xf32, #tpu.memory_space<vmem>>, vector<8x128xf32>
    %c0_17 = arith.constant 0 : index
    %c0_18 = arith.constant 0 : index
    %21 = vector.load %arg9[%c0_17, %c0_18] : memref<8x1xf32, #tpu.memory_space<vmem>>, vector<8x1xf32>
    %22 = vector.broadcast %21 : vector<8x1xf32> to vector<8x128xf32>
    %23 = arith.mulf %22, %20 : vector<8x128xf32>
    %24 = arith.addf %19, %23 : vector<8x128xf32>
    %c0_19 = arith.constant 0 : index
    %c0_20 = arith.constant 0 : index
    %25 = vector.load %arg11[%c0_19, %c0_20] : memref<8x128xf32, #tpu.memory_space<vmem>>, vector<8x128xf32>
    tpu.vector_store %arg11[%c0_19, %c0_20], %24 {strides = array<i32>} : memref<8x128xf32, #tpu.memory_space<vmem>>, vector<8x128xf32>,
    %26 = arith.mulf %20, %20 : vector<8x128xf32>
    %cst_21 = arith.constant dense<0.000000e+00> : vector<128xf32>
    %27 = vector.multi_reduction <add>, %26, %cst_21 [0] : vector<8x128xf32> to vector<128xf32>
    %28 = vector.shape_cast %27 : vector<128xf32> to vector<1x128xf32>
    %cst_22 = arith.constant -5.000000e-01 : f32
    %29 = vector.broadcast %cst_22 : f32 to vector<1x128xf32>
    %30 = arith.mulf %29, %28 : vector<1x128xf32>
    %c0_23 = arith.constant 0 : index
    %c0_24 = arith.constant 0 : index
    %31 = memref.load %arg1[%c0_23, %c0_24] : memref<1x1xf32, #tpu.memory_space<smem>>
    %32 = vector.broadcast %31 : f32 to vector<1x128xf32>
    %33 = arith.addf %30, %32 : vector<1x128xf32>
    %c0_25 = arith.constant 0 : index
    %c0_26 = arith.constant 0 : index
    %34 = vector.load %arg12[%c0_25, %c0_26] : memref<1x128xf32, #tpu.memory_space<vmem>>, vector<1x128xf32>
    tpu.vector_store %arg12[%c0_25, %c0_26], %33 {strides = array<i32>} : memref<1x128xf32, #tpu.memory_space<vmem>>, vector<1x128xf32>,
    return
  }
  func.func @transform_0(%arg0: i32) -> (i32, i32) {
    %c0_i32 = arith.constant 0 : i32
    %c0_i32_0 = arith.constant 0 : i32
    %c0_i32_1 = arith.constant 0 : i32
    return %c0_i32, %c0_i32_0 : i32, i32
  }
  func.func @transform_1(%arg0: i32) -> (i32, i32) {
    %c0_i32 = arith.constant 0 : i32
    %c0_i32_0 = arith.constant 0 : i32
    return %c0_i32, %arg0 : i32, i32
  }
  func.func @transform_2(%arg0: i32) -> (i32, i32) {
    %c0_i32 = arith.constant 0 : i32
    %c0_i32_0 = arith.constant 0 : i32
    %c0_i32_1 = arith.constant 0 : i32
    return %c0_i32, %c0_i32_0 : i32, i32
  }
  func.func @transform_3(%arg0: i32) -> (i32, i32) {
    %c0_i32 = arith.constant 0 : i32
    %c0_i32_0 = arith.constant 0 : i32
    %c0_i32_1 = arith.constant 0 : i32
    return %c0_i32, %c0_i32_0 : i32, i32
  }
  func.func @transform_4(%arg0: i32) -> (i32, i32) {
    %c0_i32 = arith.constant 0 : i32
    %c0_i32_0 = arith.constant 0 : i32
    %c0_i32_1 = arith.constant 0 : i32
    return %c0_i32, %c0_i32_0 : i32, i32
  }
  func.func @transform_5(%arg0: i32) -> (i32, i32) {
    %c0_i32 = arith.constant 0 : i32
    %c0_i32_0 = arith.constant 0 : i32
    %c0_i32_1 = arith.constant 0 : i32
    return %c0_i32, %c0_i32_0 : i32, i32
  }
  func.func @transform_6(%arg0: i32) -> (i32, i32) {
    %c0_i32 = arith.constant 0 : i32
    %c0_i32_0 = arith.constant 0 : i32
    %c0_i32_1 = arith.constant 0 : i32
    return %c0_i32, %c0_i32_0 : i32, i32
  }
  func.func @transform_7(%arg0: i32) -> (i32, i32) {
    %c0_i32 = arith.constant 0 : i32
    %c0_i32_0 = arith.constant 0 : i32
    %c0_i32_1 = arith.constant 0 : i32
    return %c0_i32, %c0_i32_0 : i32, i32
  }
  func.func @transform_8(%arg0: i32) -> (i32, i32) {
    %c0_i32 = arith.constant 0 : i32
    %c0_i32_0 = arith.constant 0 : i32
    %c0_i32_1 = arith.constant 0 : i32
    return %c0_i32, %c0_i32_0 : i32, i32
  }
  func.func @transform_9(%arg0: i32) -> (i32, i32) {
    %c0_i32 = arith.constant 0 : i32
    %c0_i32_0 = arith.constant 0 : i32
    return %c0_i32, %arg0 : i32, i32
  }
  func.func @transform_10(%arg0: i32) -> (i32, i32) {
    %c0_i32 = arith.constant 0 : i32
    %c0_i32_0 = arith.constant 0 : i32
    return %c0_i32, %arg0 : i32, i32
  }
  func.func @transform_11(%arg0: i32) -> (i32, i32) {
    %c0_i32 = arith.constant 0 : i32
    %c0_i32_0 = arith.constant 0 : i32
    return %c0_i32, %arg0 : i32, i32
  }
}

</mosaic_0001>

<bundles_post_ra>
// kernel: tpu_custom_call.1
= control target key start
LH: loop header
LB: loop body
LE: loop exit
PB: predicated region body
PF: predicated region fallthrough
CT: control target
= control target key end

     0   :  { %18 = vsyncpa [#allocation4], 0  ;;  %vm87_vm0 = vcmask 130048   ;;  %v467_v3 = vmov 0   ;;  %s613_s0 = inlined_call_operand.<no memory space> [shape: f32[1,1], index: 0, kind: input, shape index: {}]   ;;  %s614_s1 = inlined_call_operand.vmem [shape: bf16[16,128], index: 1, kind: input, shape index: {}]   ;;  %s615_s2 = inlined_call_operand.vmem [shape: bf16[32,16], index: 2, kind: input, shape index: {}]   ;;  %s616_s3 = inlined_call_operand.vmem [shape: f32[32,1], index: 3, kind: input, shape index: {}]   ;;  %s617_s4 = inlined_call_operand.vmem [shape: bf16[32,32], index: 4, kind: input, shape index: {}]   ;;  %s618_s5 = inlined_call_operand.vmem [shape: f32[32,1], index: 5, kind: input, shape index: {}]   ;;  %s619_s6 = inlined_call_operand.vmem [shape: bf16[8,32], index: 6, kind: input, shape index: {}]   ;;  %s620_s7 = inlined_call_operand.vmem [shape: f32[8,1], index: 7, kind: input, shape index: {}]   ;;  %s621_s8 = inlined_call_operand.vmem [shape: f32[8,1], index: 8, kind: input, shape index: {}]   ;;  %s622_s9 = inlined_call_operand.vmem [shape: f32[8,128], index: 9, kind: input, shape index: {}]   ;;  %s623_s10 = inlined_call_operand.hbm [shape: f32[8,128], index: 10, kind: output, shape index: {0}]   ;;  %s624_s11 = inlined_call_operand.hbm [shape: f32[1,128], index: 11, kind: output, shape index: {1}]  }
   0x1   :  { %v398_v0 = vld [vmem:[%s614_s1] sm:$0xff]   ;;  %v400_v2 = vld [vmem:[%s615_s2 + $0x8] sm:$0xff]   ;;  %396 = vset.pattern.permute.xlu0 %v467_v3  ;;  %v49_v5 = vld [vmem:[%s616_s3 + $0x10] sm:$0xff]  ;;  %397 = vset.pattern.permute.xlu1 %v467_v3 }
   0x2   :  { %v399_v1 = vld [vmem:[%s615_s2] sm:$0xff]   ;;  %369 = vmatprep.subr.bf16.mxu0 %v398_v0  ;;  %63 = vperm.xlu1 %397, %v49_v5   ;;  %v48_v6 = vld [vmem:[%s616_s3 + $0x8] sm:$0xff]  ;;  %v50_v7 = vld [vmem:[%s616_s3 + $0x18] sm:$0xff] }
   0x3   :  { %370 = vmatpush3.bf16.msra.mxu0 %v398_v0  ;;  %371 = vmatprep.mubr.msk.bf16.mxu0 %vm87_vm0, %v399_v1  ;;  %v47_v4 = vld [vmem:[%s616_s3] sm:$0xff] }
   0x4   :  { %53 = vperm.xlu0 %396, %v47_v4  }
   0x6   :  { %372 = vmatmul.mubr.msk.bf16.vlgmr.msra.gmra.mrb[0].mxu0 %vm87_vm0, %v400_v2 }
   0x7   :  { %19 = vsyncpa [#allocation6], 0  ;;  %68 = vperm.xlu1 %397, %v50_v7   ;;  %v153_v8 = vld [vmem:[%s618_s5] sm:$0xff]  ;;  %v154_v9 = vld [vmem:[%s618_s5 + $0x8] sm:$0xff]  ;;  %vm187_vm1 = vcmask 261120   ;;  %v468_v34 = vmov 0.0   ;;  %v318_v63 = vstv %s613_s0 }
   0x8   :  { %58 = vperm.xlu0 %396, %v48_v6   ;;  %v155_v10 = vld [vmem:[%s618_s5 + $0x10] sm:$0xff]  ;;  %v156_v11 = vld [vmem:[%s618_s5 + $0x18] sm:$0xff]  ;;  %v250_v12 = vld [vmem:[%s620_s7] sm:$0xff]  ;;  %383 = vmatprep.subr.bf16.mxu0 %v468_v34  ;;  %vm469_vm2 = vmmov 0  }
   0x9   :  { %v300_v13 = vld [vmem:[%s621_s8] sm:$0xff]  ;;  %v402_v33 = vld [vmem:[%s617_s4 + $0x8] sm:$0xff]   ;;  %387 = vmatprep.mubr.msk.bf16.mxu0 %vm469_vm2, %v468_v34 }
   0xa   :  { %v401_v14 = vld [vmem:[%s617_s4] sm:$0xff]  }
   0xb   :  { %164 = vperm.xlu1 %397, %v154_v9   ;;  %379 = vmatprep.mubr.msk.bf16.mxu1 %vm187_vm1, %v401_v14  ;;  %v247_v53 = vld [vmem:[%s619_s6] sm:$0xf]  ;;  %s470_s6 = smov [#allocation5]  }
   0xc   :  { %159 = vperm.xlu0 %396, %v153_v8   ;;  %v299_v54 = vld [vmem:[%s622_s9] sm:$0xff]  ;;  %s337_s26 = sshll.u32 %s470_s6, 4  ;;  %s338_s26 = int_to_ptr.vmem [resolvable:$true] %s337_s26 }
   0xd   :  { %v309_v55 = vmul.f32 %v299_v54, %v299_v54  ;;  %s419_s27 = scalar_lea.vmem %s338_s26, 16  ;;  %s423_s9 = scalar_lea.vmem %s338_s26, 32 }
   0xe   :  { %p420_p0 = scmp.ne.s32.totalorder %s338_s26, %s419_s27  ;;  %p424_p1 = scmp.lt.s32.totalorder %s338_s26, %s338_s26 }
   0xf   :  { %174 = vperm.xlu1 %397, %v156_v11   ;;  %v310_v56 = vrot.slane %v309_v55, 4  ;;  %p425_p2 = scmp.lt.s32.totalorder %s423_s9, %s419_s27 }
  0x10   :  { %169 = vperm.xlu0 %396, %v155_v10  }
  0x11   :  { %v311_v57 = vadd.f32 %v310_v56, %v309_v55  ;;  %p426_p3 = por %p425_p2, %p424_p1 }
  0x13   :  { %303 = vperm.xlu1 %397, %v300_v13   ;;  %v312_v58 = vrot.slane %v311_v57, 2  ;;  %p427_p4 = pnand %p426_p3, %p420_p0 }
  0x14   :  { %253 = vperm.xlu0 %396, %v250_v12  }
  0x15   :  { %v313_v59 = vadd.f32 %v312_v58, %v311_v57 }
  0x17   :  { %v314_v60 = vrot.slane %v313_v59, 1 }
  0x19   :  { %v315_v61 = vadd.f32 %v314_v60, %v313_v59 }
  0x1b   :  { %v316_v62 = vmul.f32 -0.5, %v315_v61 }
  0x1d   :  { %v319_v0 = vadd.f32 %v318_v63, %v316_v62 }
  0x1f   :  { %320 = vst [vmem:[#allocation5] sm:$0x1] %v319_v0 }
  0x81   :  { %v64_v15 = vpop.permute.xlu1 %63 }
  0x83   :  { %v54_v16 = vpop.permute.xlu0 %53 }
  0x86   :  { %v69_v20 = vpop.permute.xlu1 %68 }
  0x87   :  { %v59_v23 = vpop.permute.xlu0 %58 }
  0x8a   :  { %v165_v36 = vpop.permute.xlu1 %164 }
  0x8b   :  { %v160_v35 = vpop.permute.xlu0 %159 }
  0x8e   :  { %v175_v41 = vpop.permute.xlu1 %174 }
  0x8f   :  { %v170_v37 = vpop.permute.xlu0 %169 }
  0xd9   :  { %v373_v17 = vpop.f32.mrb[0].mxu0 }
  0xda   :  { %v137_v18 = vadd.f32 %v373_v17, %v64_v15  ;;  %v128_v19 = vpop.f32.mrb[1].mxu0 }
  0xdb   :  { %v129_v21 = vadd.f32 %v128_v19, %v54_v16  ;;  %v374_v22 = vpop.f32.mrb[2].mxu0 }
  0xdc   :  { %403 = vtanh.f32 %v137_v18  ;;  %v140_v24 = vadd.f32 %v374_v22, %v69_v20  ;;  %v131_v25 = vpop.f32.mrb[3].mxu0 }
  0xdd   :  { %405 = vtanh.f32 %v129_v21  ;;  %v132_v26 = vadd.f32 %v131_v25, %v59_v23 }
  0xde   :  { %407 = vtanh.f32 %v140_v24 }
  0xdf   :  { %409 = vtanh.f32 %v132_v26 }
  0xe6   :  { %v404_v27 = vpop.eup %403 }
  0xe7   :  { %v406_v28 = vpop.eup %405 }
  0xe8   :  { %v408_v29 = vpop.eup %407 }
  0xe9   :  { %v410_v30 = vpop.eup %409  ;;  %v152_v31 = vpack.c.bf16 %v408_v29, %v404_v27 }
  0xea   :  { %v151_v32 = vpack.c.bf16 %v410_v30, %v406_v28 }
  0xec   :  { %375 = vmatprep.subr.bf16.mxu1 %v151_v32 }
  0xed   :  { %376 = vmatpush3.bf16.msra.mxu1 %v151_v32 }
  0xee   :  { %377 = vmatprep.subr.bf16.mxu1 %v152_v31 }
  0xf1   :  { %378 = vmatpush3.bf16.msra.mxu1 %v152_v31 }
  0xf4   :  { %380 = vmatmul.mubr.msk.bf16.vlgmr.msra.gmra.mrb[0].mxu1 %vm187_vm1, %v402_v33 }
 0x1c7   :  { %v381_v38 = vpop.f32.mrb[0].mxu1 }
 0x1c8   :  { %v237_v39 = vadd.f32 %v381_v38, %v170_v37  ;;  %v228_v40 = vpop.f32.mrb[1].mxu1 }
 0x1c9   :  { %v229_v42 = vadd.f32 %v228_v40, %v160_v35  ;;  %v382_v43 = vpop.f32.mrb[2].mxu1 }
 0x1ca   :  { %411 = vtanh.f32 %v237_v39  ;;  %v240_v44 = vadd.f32 %v382_v43, %v175_v41  ;;  %v231_v45 = vpop.f32.mrb[3].mxu1 }
 0x1cb   :  { %413 = vtanh.f32 %v229_v42  ;;  %v232_v46 = vadd.f32 %v231_v45, %v165_v36 }
 0x1cc   :  { %415 = vtanh.f32 %v240_v44 }
 0x1cd   :  { %417 = vtanh.f32 %v232_v46 }
 0x1d4   :  { %v412_v47 = vpop.eup %411 }
 0x1d5   :  { %v414_v48 = vpop.eup %413 }
 0x1d6   :  { %v416_v49 = vpop.eup %415 }
 0x1d7   :  { %v418_v50 = vpop.eup %417  ;;  %v249_v51 = vpack.c.bf16 %v416_v49, %v412_v47 }
 0x1d8   :  { %v248_v52 = vpack.c.bf16 %v418_v50, %v414_v48 }
 0x1da   :  { %384 = vmatpush3.bf16.msra.mxu0 %v248_v52 }
 0x1db   :  { %385 = vmatprep.subr.bf16.mxu0 %v468_v34 }
 0x1de   :  { %386 = vmatpush3.bf16.msra.mxu0 %v249_v51 }
 0x1e1   :  { %388 = vmatmul.mubr.msk.bf16.vlgmr.msra.gmra.mrb[4].mxu0 %vm187_vm1, %v247_v53 }
 0x1e2   :  { %430 = shalt.err (!%p427_p4)
}
 0x1e3   :  { %s431_s29 = scalar_lea.hbm %s624_s11, 16 }
 0x1e4   :  { %p432_p5 = scmp.ne.s32.totalorder %s624_s11, %s431_s29  ;;  %p435_p6 = scmp.lt.u32.totalorder %s431_s29, %s624_s11 }
 0x1e6   :  { %p437_p7 = pnand %p435_p6, %p432_p5 }
 0x1e8   :  { %440 = shalt.err (!%p437_p7)
}
 0x1e9   :  { %340 = dma.vmem_to_hbm [thread:$0]  %s338_s26, 16, %s624_s11, [#allocation6]   ;;  %v304_v1 = vpop.permute.xlu1 %303  ;;  %v254_v2 = vpop.permute.xlu0 %253 }
 0x1ea   :  { %s471_s16 = smov [#allocation3]   ;;  %v306_v4 = vmul.f32 %v304_v1, %v299_v54 }
 0x1eb   :  { %s327_s17 = sshll.u32 %s471_s16, 4  ;;  %s328_s17 = int_to_ptr.vmem [resolvable:$true] %s327_s17 }
 0x1ec   :  { %s441_s3 = scalar_lea.vmem %s328_s17, 128  ;;  %p446_p9 = scmp.lt.s32.totalorder %s328_s17, %s328_s17 }
 0x1ed   :  { %p442_p8 = scmp.ne.s32.totalorder %s328_s17, %s441_s3  ;;  %p447_p10 = scmp.lt.s32.totalorder %s441_s3, %s441_s3 }
 0x1ef   :  { %p448_p11 = por %p447_p10, %p446_p9 }
 0x1f1   :  { %p449_p12 = pnand %p448_p11, %p442_p8 }
 0x2b4   :  { %v293_v3 = vpop.f32.mrb[4].mxu0 }
 0x2b5   :  { %v294_v5 = vadd.f32 %v293_v3, %v254_v2  ;;  %v389_v6 = vpop.f32.mrb[5].mxu0 }
 0x2b6   :  { %v296_v7 = vpop.f32.mrb[6].mxu0 }
 0x2b7   :  { %v390_v8 = vpop.f32.mrb[7].mxu0  ;;  %v307_v9 = vadd.f32 %v306_v4, %v294_v5 }
 0x2b9   :  { %308 = vst [vmem:[#allocation3] sm:$0xff] %v307_v9 }
 0x2ba   :  { %452 = shalt.err (!%p449_p12)
}
 0x2bb   :  { %s453_s19 = scalar_lea.hbm %s623_s10, 128 }
 0x2bc   :  { %p454_p13 = scmp.ne.s32.totalorder %s623_s10, %s453_s19  ;;  %p457_p0 = scmp.lt.u32.totalorder %s453_s19, %s623_s10 }
 0x2be   :  { %p459_p1 = pnand %p457_p0, %p454_p13 }
 0x2c0   :  { %462 = shalt.err (!%p459_p1)
}
 0x2c1   :  { %330 = dma.vmem_to_hbm [thread:$0]  %s328_s17, 128, %s623_s10, [#allocation4]  }
 0x2c2   :  { %463 = dma.done.wait [#allocation4], 128  }
 0x2c3   :  { %464 = vsyncadd [#allocation4], 4294967168 }
 0x2c4   :  { %465 = dma.done.wait [#allocation6], 16  }
 0x2c5   :  { %466 = vsyncadd [#allocation6], 4294967280 }
 0x2c6   :  { %347 = vsyncpa [#allocation4], 1 }
 0x2c7   :  { %348 = vsyncpa [#allocation6], 1 }

</bundles_post_ra>
